<compile_context>
chip_gen: v7x
topology: tpu7x:2x2x1
jax: 0.10.0
libtpu: 0.0.40
codegen_flags: <defaults>
</compile_context>

<pallas_src>
import jax
import jax.numpy as jnp
from jax.experimental import pallas as pl
from jax.experimental.pallas import tpu as pltpu

LANES = 128


def _round_up(x: int, m: int) -> int:
    return ((x + m - 1) // m) * m


_CHIP_TUNING_CACHE = None


def _chip_tuning():
    """Per-TPU-generation block / VMEM tuning (queried once, trace-time only)."""
    global _CHIP_TUNING_CACHE
    if _CHIP_TUNING_CACHE is not None:
        return _CHIP_TUNING_CACHE
    kind = ""
    try:
        kind = jax.devices()[0].device_kind.lower()
    except Exception:
        pass
    if "v7" in kind:
        # 3.2 TB/s HBM: bigger blocks amortize the ~0.35us/step overhead, and
        # we force >= 8 grid steps so both TensorCores get work.
        cfg = dict(block_bytes=8 << 20, vmem_limit=48 << 20,
                   min_grid_steps=8, min_split_bytes=1 << 20)
    elif "v6" in kind:
        cfg = dict(block_bytes=4 << 20, vmem_limit=32 << 20,
                   min_grid_steps=1, min_split_bytes=1 << 20)
    else:  # v5e / unknown: 2 MiB blocks; explicit limit (scoped default is 16 MiB).
        cfg = dict(block_bytes=2 << 20, vmem_limit=32 << 20,
                   min_grid_steps=1, min_split_bytes=1 << 20)
    _CHIP_TUNING_CACHE = cfg
    return cfg


def _make_clamped_relu_kernel(clamp_val):
    """Elementwise kernel with clamp_val baked in as a closure constant."""

    def kernel(x_ref, o_ref):
        x = x_ref[...]
        lo = jnp.zeros((), dtype=x.dtype)
        hi = jnp.asarray(clamp_val, dtype=x.dtype)
        o_ref[...] = jnp.minimum(jnp.maximum(x, lo), hi)

    return kernel


def _clamp_plain(x, clamp_val):
    """Plain-JAX clamp with identical dtype semantics (used for tiny tails)."""
    lo = jnp.zeros((), dtype=x.dtype)
    hi = jnp.asarray(clamp_val, dtype=x.dtype)
    return jnp.minimum(jnp.maximum(x, lo), hi)


def _clamped_relu_2d(x2d, clamp_val, in_place):
    """Run the clamp kernel on a lane-dense (rows, 128) slab."""
    rows, _ = x2d.shape
    dtype = x2d.dtype
    itemsize = jnp.dtype(dtype).itemsize
    # Packed sublane count: 8 rows/vreg for 32-bit, 16 for 16-bit, 32 for 8-bit.
    sublane_mult = 8 * max(1, 4 // itemsize)
    cfg = _chip_tuning()

    target_rows = max(sublane_mult, cfg["block_bytes"] // (LANES * itemsize))
    target_rows = (target_rows // sublane_mult) * sublane_mult
    min_split_rows = max(
        sublane_mult,
        _round_up(max(1, cfg["min_split_bytes"] // (LANES * itemsize)),
                  sublane_mult))
    # Prefer >= min_grid_steps blocks (v7x: shard across both TensorCores),
    # but never shrink a block below ~min_split_bytes.
    cap_rows = _round_up(-(-rows // cfg["min_grid_steps"]), sublane_mult)

    block_rows = min(target_rows, max(min_split_rows, cap_rows))
    if block_rows >= rows:
        # Full-extent single block (exempt from the (8,128) divisibility rule).
        block_rows = rows
        grid = (1,)
    else:
        # Ragged tail block (if any) is handled by Pallas under a cdiv grid.
        grid = (pl.cdiv(rows, block_rows),)

    n_kernel = rows * LANES
    out2d = pl.pallas_call(
        _make_clamped_relu_kernel(clamp_val),
        out_shape=jax.ShapeDtypeStruct((rows, LANES), dtype),
        grid=grid,
        in_specs=[pl.BlockSpec((block_rows, LANES), lambda i: (i, 0))],
        out_specs=pl.BlockSpec((block_rows, LANES), lambda i: (i, 0)),
        compiler_params=pltpu.CompilerParams(
            dimension_semantics=("parallel",),
            vmem_limit_bytes=cfg["vmem_limit"],
        ),
        cost_estimate=pl.CostEstimate(
            flops=2 * n_kernel,            # one max + one min per element
            transcendentals=0,
            bytes_accessed=2 * n_kernel * itemsize),
        input_output_aliases=({0: 0} if in_place else {}),
    )(x2d)
    return out2d


def _clamped_relu_impl(x, clamp_val, in_place=False):
    orig_shape = x.shape
    n = x.size
    if n == 0:
        return x

    x_flat = x.reshape(-1)          # bitcast under jit
    rem = n % LANES
    n_aligned = n - rem

    if n_aligned == 0:
        # Fewer than 128 elements: a kernel launch is not worth it.
        return _clamp_plain(x_flat, clamp_val).reshape(orig_shape)

    head2d = x_flat[:n_aligned].reshape(n_aligned // LANES, LANES)
    out_head = _clamped_relu_2d(head2d, clamp_val, in_place).reshape(-1)

    if rem == 0:
        return out_head.reshape(orig_shape)

    # Ragged tail (<= 127 elements): clamp with plain ops instead of padding +
    # re-slicing the whole tensor (saves two full HBM passes on ragged shapes).
    tail = _clamp_plain(x_flat[n_aligned:], clamp_val)
    return jnp.concatenate([out_head, tail]).reshape(orig_shape)


_clamped_relu_jit = jax.jit(
    _clamped_relu_impl, static_argnames=("clamp_val", "in_place"))
_clamped_relu_donating = jax.jit(
    _clamped_relu_impl, static_argnames=("clamp_val", "in_place"),
    donate_argnums=(0,))


def clamped_relu(x: jax.Array, clamp_val: float = 6.0, *,
                 donate: bool = False) -> jax.Array:
    """Equivalent of torch.clamp(x, min=0, max=clamp_val) (forward only).

    donate=True reuses the input HBM buffer for the output (the input array is
    invalidated, as with any JAX donation).
    """
    clamp_val = float(clamp_val)
    if donate:
        return _clamped_relu_donating(x, clamp_val=clamp_val, in_place=True)
    return _clamped_relu_jit(x, clamp_val=clamp_val, in_place=False)


class CustomClampedReLU:
    """JAX/Pallas analogue of the PyTorch CustomClampedReLU module (forward)."""

    def __init__(self, clamp_val: float = 6.0):
        self.clamp_val = clamp_val

    def __call__(self, x: jax.Array, *, donate: bool = False) -> jax.Array:
        return clamped_relu(x, self.clamp_val, donate=donate)

    def __repr__(self):
        return f"{self.__class__.__name__}(clamp_val={self.clamp_val})"


if __name__ == "__main__":
    key = jax.random.PRNGKey(0)
    # NCHW input, small shapes: batch=2, channels=4, spatial=16x16.
    x = jax.random.normal(key, (2, 4, 16, 16), dtype=jnp.float32) * 5.0

    module = CustomClampedReLU(clamp_val=6.0)

    ref = jnp.clip(x, 0.0, 6.0)
    out = jax.block_until_ready(module(x))
    assert out.shape == x.shape and out.dtype == x.dtype
    assert jnp.allclose(out, ref), "mismatch vs reference clamp"

    # Non-128-divisible size exercises the aligned-prefix + plain-tail path.
    x2 = jax.random.normal(jax.random.PRNGKey(1), (3, 5, 7, 11),
                           dtype=jnp.float32) * 5.0
    ref2 = jnp.clip(x2, 0.0, 6.0)
    out2 = jax.block_until_ready(module(x2))
    assert jnp.allclose(out2, ref2), "mismatch on ragged shape"

    # Donating / in-place path (input buffer is consumed).
    x3 = jax.random.normal(jax.random.PRNGKey(2), (8, 256),
                           dtype=jnp.float32) * 5.0
    ref3 = jnp.clip(x3, 0.0, 6.0)
    out3 = jax.block_until_ready(module(x3, donate=True))
    assert jnp.allclose(out3, ref3), "mismatch on donated/in-place path"

    print("KERNEL_OK")
</pallas_src>

<mosaic_0001>
module attributes {stable_mosaic.version = 11 : i64} {
  func.func @kernel(%arg0: i32, %arg1: memref<16x128xf32, #tpu.memory_space<vmem>>, %arg2: memref<16x128xf32, #tpu.memory_space<vmem>>) attributes {dimension_semantics = [#tpu.dimension_semantics<parallel>], iteration_bounds = array<i64: 1>, scalar_prefetch = 0 : i64, scratch_operands = 0 : i64, tpu.core_type = #tpu.core_type<tc>, window_params = [{transform_indices = @transform_0, window_bounds = array<i64: 16, 128>}, {transform_indices = @transform_1, window_bounds = array<i64: 16, 128>}]} {
    %c0 = arith.constant 0 : index
    %c0_0 = arith.constant 0 : index
    %0 = vector.load %arg1[%c0, %c0_0] : memref<16x128xf32, #tpu.memory_space<vmem>>, vector<16x128xf32>
    %cst = arith.constant 0.000000e+00 : f32
    %1 = vector.broadcast %cst : f32 to vector<16x128xf32>
    %2 = arith.maximumf %0, %1 : vector<16x128xf32>
    %cst_1 = arith.constant 6.000000e+00 : f32
    %3 = vector.broadcast %cst_1 : f32 to vector<16x128xf32>
    %4 = arith.minimumf %2, %3 : vector<16x128xf32>
    %c0_2 = arith.constant 0 : index
    %c0_3 = arith.constant 0 : index
    %5 = vector.load %arg2[%c0_2, %c0_3] : memref<16x128xf32, #tpu.memory_space<vmem>>, vector<16x128xf32>
    tpu.vector_store %arg2[%c0_2, %c0_3], %4 {strides = array<i32>} : memref<16x128xf32, #tpu.memory_space<vmem>>, vector<16x128xf32>,
    return
  }
  func.func @transform_0(%arg0: i32) -> (i32, i32) {
    %c0_i32 = arith.constant 0 : i32
    %c0_i32_0 = arith.constant 0 : i32
    return %arg0, %c0_i32 : i32, i32
  }
  func.func @transform_1(%arg0: i32) -> (i32, i32) {
    %c0_i32 = arith.constant 0 : i32
    %c0_i32_0 = arith.constant 0 : i32
    return %arg0, %c0_i32 : i32, i32
  }
}

</mosaic_0001>

<bundles_post_ra>
// kernel: _clamped_relu_impl.1
= control target key start
LH: loop header
LB: loop body
LE: loop exit
PB: predicated region body
PF: predicated region fallthrough
CT: control target
= control target key end

     0   :  { %s42_s0 = inlined_call_operand.vmem [shape: f32[16,128], index: 0, kind: input, shape index: {}]   ;;  %s43_s1 = inlined_call_operand.vmem [shape: f32[16,128], index: 1, kind: output, shape index: {}]  }
   0x1   :  { %v8_v0 = vld [vmem:[%s42_s0] sm:$0xff]  ;;  %v9_v1 = vld [vmem:[%s42_s0 + $0x8] sm:$0xff] }
   0x2   :  { %v10_v2 = vmax.f32 %v8_v0, 0.0  ;;  %v11_v3 = vmax.f32 %v9_v1, 0.0 }
   0x4   :  { %v12_v4 = vmin.f32 %v10_v2, 6.0  ;;  %v13_v5 = vmin.f32 %v11_v3, 6.0 }
   0x6   :  { %14 = vst [vmem:[%s43_s1] sm:$0xff] %v12_v4  ;;  %15 = vst [vmem:[%s43_s1 + $0x8] sm:$0xff] %v13_v5 }

</bundles_post_ra>
